<compile_context>
chip_gen: v6e
topology: v6e:2x2x1
jax: 0.10.0
libtpu: 0.0.40
codegen_flags: <defaults>
</compile_context>

<pallas_src>
import math
import functools

import jax
import jax.numpy as jnp
from jax import lax
from jax.experimental import pallas as pl
from jax.experimental.pallas import tpu as pltpu

_LANE = 128
_NEG_INF = float("-inf")
_DEAD = -1e30            # "row is fully masked" threshold


# ----------------------------------------------------------------------------
# small helpers
# ----------------------------------------------------------------------------
def _round_up(x, m):
    return ((x + m - 1) // m) * m


def _pad_last(x, target, value=0.0):
    pad = target - x.shape[-1]
    if pad <= 0:
        return x
    widths = [(0, 0)] * (x.ndim - 1) + [(0, pad)]
    return jnp.pad(x, widths, mode="constant", constant_values=value)


def _vmem_specs(n):
    return [pl.BlockSpec(memory_space=pltpu.MemorySpace.VMEM) for _ in range(n)]


def _head_mask(head_num, head_dim, dtype=jnp.float32):
    """gm[h, c] = 1 iff column c belongs to head h (block-diagonal selector)."""
    c_tot = head_num * head_dim
    h = lax.broadcasted_iota(jnp.int32, (head_num, c_tot), 0)
    c = lax.broadcasted_iota(jnp.int32, (head_num, c_tot), 1)
    return ((c >= h * head_dim) & (c < (h + 1) * head_dim)).astype(dtype)


def _init_linear(key, fan_in, fan_out, bias=True):
    bound = 1.0 / math.sqrt(fan_in)
    kw, kb = jax.random.split(key)
    w = jax.random.uniform(kw, (fan_in, fan_out), jnp.float32, -bound, bound)
    if not bias:
        return w
    b = jax.random.uniform(kb, (1, fan_out), jnp.float32, -bound, bound)
    return w, b


# ----------------------------------------------------------------------------
# setup-time K/V projection kernel (off the hot decode loop)
# ----------------------------------------------------------------------------
def _proj_kv_kernel(x_ref, w_ref, o_ref):
    o_ref[...] = jnp.dot(x_ref[...], w_ref[...],
                         preferred_element_type=jnp.float32).astype(o_ref.dtype)


def project_kv(x, w):
    """x: [B, N, E] @ w: [E, F] -> [B, N, F] bf16 in one lane-dense matmul (no grid)."""
    B, N, E = x.shape
    F = w.shape[1]
    x2 = x.reshape(B * N, E).astype(jnp.bfloat16)
    out = pl.pallas_call(
        _proj_kv_kernel,
        out_shape=jax.ShapeDtypeStruct((B * N, F), jnp.bfloat16),
        in_specs=_vmem_specs(2),
        out_specs=pl.BlockSpec(memory_space=pltpu.MemorySpace.VMEM),
    )(x2, w)
    return out.reshape(B, N, F)


# ----------------------------------------------------------------------------
# the fused decode-step kernel
# ----------------------------------------------------------------------------
def _decode_step_kernel(embed_ref, prev_ref, ope_step_ref, finish_ref,
                        mask_jm_ref, mask_om_ref, mask_veh_ref, gumbel_ref,
                        kv_ref, w_ref, b_ref,
                        f32_out_ref, idx_out_ref, *,
                        head_num, qkv_dim, emb,
                        n_ope, n_ma, n_veh,
                        emb_ma_off, emb_veh_off,
                        inv_sqrt_qkv, inv_sqrt_emb, logit_clipping,
                        softmax, job_embedding):
    f32, bf16 = jnp.float32, jnp.bfloat16
    H, D, E = head_num, qkv_dim, emb
    C = H * D
    B = embed_ref.shape[0]
    Np = kv_ref.shape[-1]
    n_nodes = n_ope + n_ma + n_veh
    out_w = f32_out_ref.shape[-1]

    # ---- hoisted constants (built once, reused by every stage) -------------
    col = lax.broadcasted_iota(jnp.int32, (1, Np), 1)
    colf = col.astype(f32)
    gmH = _head_mask(H, D)               # [H, C]
    gm2H = _head_mask(2 * H, D)          # [2H, 2C]
    gm2 = _head_mask(2, E)               # [2, 2E]
    h2 = lax.broadcasted_iota(jnp.int32, (1, 2 * H, 1), 1)
    s2 = lax.broadcasted_iota(jnp.int32, (1, 2, 1), 1)

    def place(piece01, off):
        """Embed a [B, n] 0/1 array into lanes [off, off+n) of a zero [B, Np] array."""
        n = piece01.shape[-1]
        r = lax.broadcasted_iota(jnp.int32, (n, Np), 0)
        c = lax.broadcasted_iota(jnp.int32, (n, Np), 1)
        proj = (c == r + off).astype(f32)
        return jnp.dot(piece01, proj, preferred_element_type=f32)

    def to_ninf(ok_pad):
        return jnp.where(ok_pad > 0.5, 0.0, _NEG_INF)

    # ---- masks (built in-kernel from the raw int masks) ---------------------
    mask_om = mask_om_ref[...].astype(f32)        # [B, O, M]
    mask_jm = mask_jm_ref[...].astype(f32)        # [B, J, M]
    mask_v = mask_veh_ref[...].astype(f32)        # [B, V]
    n_om = mask_om.shape[1]
    n_jm = mask_jm.shape[1]

    ok_ope = (jnp.sum(mask_om, axis=-1) > 0.0).astype(f32)               # [B, O]
    ones_j = jnp.ones((B, 1, n_jm), f32)
    ok_ma = (jnp.einsum('bqj,bjm->bqm', ones_j, mask_jm,
                        preferred_element_type=f32)[:, 0, :] > 0.0).astype(f32)
    ok_veh = (mask_v > 0.0).astype(f32)

    ok_ope_p = place(ok_ope, 0)
    m_ope = to_ninf(ok_ope_p)                                            # [B, Np]
    m_veh = to_ninf(place(ok_veh, 0))
    m_nodes = to_ninf(ok_ope_p + place(ok_ma, n_ope) + place(ok_veh, n_ope + n_ma))

    fb_nodes = jnp.where(col < n_nodes, 0.0, _NEG_INF)                   # [1, Np]
    fb_ope = jnp.where(col < n_ope, 0.0, _NEG_INF)
    fb_ma = jnp.where(col < n_ma, 0.0, _NEG_INF)
    fb_veh = jnp.where(col < n_veh, 0.0, _NEG_INF)

    # ---- weight / bias slab slices (static offsets) -------------------------
    r0 = 4 * E
    r1 = r0 + E
    r2 = r1 + C
    r3 = r2 + E
    r4 = r3 + 2 * C
    r5 = r4 + E
    w_ctx = w_ref[0:r0, 0:E]               # [4E, E]
    wq_nodes = w_ref[r0:r1, 0:C]
    wc_nodes = w_ref[r1:r2, 0:E]
    wq_ov = w_ref[r2:r3, 0:2 * C]
    wc_ov = w_ref[r3:r4, 0:2 * E]
    wq_ma = w_ref[r4:r5, 0:C]
    wc_ma = w_ref[r5:r5 + C, 0:E]

    bias = b_ref[...]                      # [1, 5E]
    b_proj = bias[:, 0:E]
    bc_nodes = bias[:, E:2 * E]
    bc_ov = bias[:, 2 * E:4 * E]
    bc_ma = bias[:, 4 * E:5 * E]

    # ---- K/V/enc slab slices (static offsets) --------------------------------
    kt_nodes = kv_ref[:, 0:C, :]
    vt_nodes = kv_ref[:, C:2 * C, :]
    kt_ov = kv_ref[:, 2 * C:4 * C, :]
    vt_ov = kv_ref[:, 4 * C:6 * C, :]
    kt_ma = kv_ref[:, 6 * C:7 * C, :]
    vt_ma = kv_ref[:, 7 * C:8 * C, :]
    enc_ov = kv_ref[:, 8 * C:8 * C + 2 * E, :]
    enc_ma = kv_ref[:, 8 * C + 2 * E:8 * C + 3 * E, :]

    # ---- graph mean + context projection -------------------------------------
    embed = embed_ref[...]                                       # [B, Nn, E] f32
    n_emb = embed.shape[1]
    mean_w = jnp.full((B, 1, n_emb), 1.0 / n_emb, f32)
    graph = jnp.einsum('bqn,bne->bqe', mean_w, embed,
                       preferred_element_type=f32)[:, 0, :]      # [B, E]
    prev = prev_ref[...]                                         # [B, 3E]
    tmp_ctx = (jnp.dot(graph.astype(bf16), w_ctx[0:E, :], preferred_element_type=f32)
               + jnp.dot(prev.astype(bf16), w_ctx[E:, :], preferred_element_type=f32)
               + b_proj)

    # ---- shared building blocks ----------------------------------------------
    def softmax_rows(s, fb):
        m = jnp.max(s, axis=-1, keepdims=True)
        dead = m <= _DEAD
        s = jnp.where(dead, fb, s)
        m = jnp.where(dead, 0.0, m)
        e = jnp.exp(s - m)
        return e * pl.reciprocal(jnp.sum(e, axis=-1, keepdims=True), approx=True)

    def log_softmax_rows(s, fb):
        m = jnp.max(s, axis=-1, keepdims=True)
        dead = m <= _DEAD
        s = jnp.where(dead, fb, s)
        m = jnp.where(dead, 0.0, m)
        lse = m + jnp.log(jnp.sum(jnp.exp(s - m), axis=-1, keepdims=True))
        return s - lse

    def mha(x, wq, kt, vt, gm, mask3, fb3, wc, bc, n_heads):
        q = jnp.dot(x.astype(bf16), wq, preferred_element_type=f32)      # [B, nC]
        gq = gm[None, :, :] * q[:, None, :]                              # [B, nH, nC]
        s = jnp.einsum('bhc,bcn->bhn', gq.astype(bf16), kt,
                       preferred_element_type=f32) * inv_sqrt_qkv + mask3
        w = softmax_rows(s, fb3)
        o = jnp.einsum('bhn,bcn->bhc', w.astype(bf16), vt,
                       preferred_element_type=f32)                       # [B, nH, nC]
        out = o[:, 0, :] * gm[0:1, :]
        for h in range(1, n_heads):
            out = out + o[:, h, :] * gm[h:h + 1, :]
        return jnp.dot(out.astype(bf16), wc, preferred_element_type=f32) + bc

    def pick(logp, noise):
        """Gumbel-max selection + selected log-prob; noise==0 -> greedy argmax."""
        z = logp + noise
        mx = jnp.max(z, axis=-1, keepdims=True)
        idxf = jnp.min(jnp.where(z >= mx, colf, float(Np)), axis=-1, keepdims=True)
        sel = idxf.astype(jnp.int32)                                     # [B, 1]
        lp = jnp.sum(jnp.where(col == sel, logp, 0.0), axis=-1, keepdims=True)
        return sel, lp

    def gather_embed(sel_abs):
        oh = (lax.broadcasted_iota(jnp.int32, (1, n_emb), 1) == sel_abs).astype(f32)
        return jnp.einsum('bqn,bne->bqe', oh[:, None, :], embed,
                          preferred_element_type=f32)[:, 0, :]           # [B, E]

    # ---- stage 1: decoder context = masked MHA over every node ---------------
    context = mha(tmp_ctx, wq_nodes, kt_nodes, vt_nodes, gmH,
                  m_nodes[:, None, :], fb_nodes[:, None, :], wc_nodes, bc_nodes, H)

    # ---- stage 2: fused operation + vehicle attention / log-probs ------------
    mask_ov = jnp.where(h2 < H, m_ope[:, None, :], m_veh[:, None, :])    # [B, 2H, Np]
    fb_ov = jnp.where(h2 < H, fb_ope[:, None, :], fb_veh[:, None, :])
    mh_ov = mha(context, wq_ov, kt_ov, vt_ov, gm2H, mask_ov, fb_ov,
                wc_ov, bc_ov, 2 * H)                                      # [B, 2E]

    mask_sc = jnp.where(s2 < 1, m_ope[:, None, :], m_veh[:, None, :])     # [B, 2, Np]
    fb_sc = jnp.where(s2 < 1, fb_ope[:, None, :], fb_veh[:, None, :])
    gq2 = gm2[None, :, :] * mh_ov[:, None, :]                             # [B, 2, 2E]
    sc = jnp.einsum('bhc,bcn->bhn', gq2.astype(bf16), enc_ov,
                    preferred_element_type=f32)                           # [B, 2, Np]
    sc = logit_clipping * jnp.tanh(sc * inv_sqrt_emb) + mask_sc
    logp_ov = log_softmax_rows(sc, fb_sc)
    logp_ope = logp_ov[:, 0, :]
    logp_veh = logp_ov[:, 1, :]

    g = gumbel_ref[...]                                                   # [B, 3, Np]
    sel_ope, lp_ope = pick(logp_ope, g[:, 0, :])
    sel_veh, lp_veh = pick(logp_veh, g[:, 2, :])

    # ---- stage 3: machine selection (mask row gathered at the selected ope) --
    oh_ope = (lax.broadcasted_iota(jnp.int32, (1, n_om), 1) == sel_ope).astype(f32)
    ma_row = jnp.einsum('bqo,bom->bqm', oh_ope[:, None, :], mask_om,
                        preferred_element_type=f32)[:, 0, :]              # [B, M]
    m_ma = to_ninf(place(ma_row, 0))

    mh_ma = mha(context, wq_ma, kt_ma, vt_ma, gmH,
                m_ma[:, None, :], fb_ma[:, None, :], wc_ma, bc_ma, H)     # [B, E]
    sc_ma = jnp.einsum('bqe,ben->bqn', mh_ma[:, None, :].astype(bf16), enc_ma,
                       preferred_element_type=f32)[:, 0, :]               # [B, Np]
    sc_ma = logit_clipping * jnp.tanh(sc_ma * inv_sqrt_emb) + m_ma
    logp_ma = log_softmax_rows(sc_ma, fb_ma)
    sel_ma, lp_ma = pick(logp_ma, g[:, 1, :])

    # ---- job index, embedding gathers, log-prob -------------------------------
    ope_step = ope_step_ref[...]                                          # [B, J] int32
    nj = ope_step.shape[1]
    jcol = lax.broadcasted_iota(jnp.int32, (1, nj), 1)
    if job_embedding:
        sel_job = sel_ope
        sel_ope_out = jnp.sum(jnp.where(jcol == sel_job, ope_step, 0),
                              axis=-1, keepdims=True)
    else:
        sel_ope_out = sel_ope
        hit = (ope_step == sel_ope)
        jf = jnp.min(jnp.where(hit, jcol.astype(f32), float(nj)),
                     axis=-1, keepdims=True)
        sel_job = jnp.minimum(jf, float(nj - 1)).astype(jnp.int32)

    e_ope = gather_embed(sel_ope)
    e_ma = gather_embed(sel_ma + emb_ma_off)
    e_veh = gather_embed(sel_veh + emb_veh_off)

    if softmax:
        lp_sum = lp_ope + lp_ma + lp_veh                     # log(ope*ma*veh prob)
        lp_sum = jnp.where(finish_ref[...] > 0, 0.0, lp_sum)  # reference: prob[finish]=1
    else:
        lp_sum = jnp.full((B, 1), _NEG_INF, f32)              # reference: prob=0 -> log=-inf

    # ---- merged outputs --------------------------------------------------------
    f32_out_ref[...] = jnp.zeros((B, out_w), f32)
    f32_out_ref[:, 0:E] = e_ope
    f32_out_ref[:, E:2 * E] = e_ma
    f32_out_ref[:, 2 * E:3 * E] = e_veh
    f32_out_ref[:, 3 * E:3 * E + 1] = lp_sum
    idx_out_ref[:, 0:1] = sel_ope_out
    idx_out_ref[:, 1:2] = sel_ma
    idx_out_ref[:, 2:3] = sel_job
    idx_out_ref[:, 3:4] = sel_veh


# ----------------------------------------------------------------------------
# Decoder module (JAX / Pallas)
# ----------------------------------------------------------------------------
class TFJSPDecoderDHJSBasePallas:
    def __init__(self, key, **model_params):
        self.model_params = model_params
        E = model_params['embedding_dim']
        H = model_params['head_num']
        D = model_params['qkv_dim']
        C = H * D
        self.E, self.H, self.D, self.C = E, H, D, C
        self.sqrt_embedding_dim = model_params['sqrt_embedding_dim']
        self.sqrt_qkv_dim = model_params['sqrt_qkv_dim']
        self.logit_clipping = model_params['logit_clipping']

        keys = jax.random.split(key, 20)
        self.encoded_NO_JOB = jax.random.uniform(keys[0], (1, 1, E), jnp.float32)  # unused in fwd

        w_proj, b_proj = _init_linear(keys[1], 4 * E, E)

        wq, wk, wv, wc, bc = {}, {}, {}, {}, {}
        stage_keys = {'nodes': (keys[2], keys[6], keys[7], keys[14]),
                      'ope': (keys[3], keys[8], keys[9], keys[15]),
                      'ma': (keys[4], keys[10], keys[11], keys[16]),
                      'veh': (keys[5], keys[12], keys[13], keys[17])}
        for s, (kq, kk, kv_, kc) in stage_keys.items():
            wq[s] = _init_linear(kq, E, C, bias=False)
            wk[s] = _init_linear(kk, E, C, bias=False)
            wv[s] = _init_linear(kv_, E, C, bias=False)
            wcs, bcs = _init_linear(kc, C, E)
            wc[s] = wcs
            bc[s] = bcs

        # fused K/V projection weights (used at set_kv time)
        self.w_kv_pair = {s: jnp.concatenate([wk[s], wv[s]], axis=1).astype(jnp.bfloat16)
                          for s in ('nodes', 'ope', 'ma', 'veh')}
        self.w_kv_all = jnp.concatenate([self.w_kv_pair[s]
                                         for s in ('nodes', 'ope', 'ma', 'veh')], axis=1)

        # one bf16 weight slab + one f32 bias slab consumed by the decode kernel
        wcol = 2 * max(E, C)

        def padc(w):
            return jnp.pad(w, ((0, 0), (0, wcol - w.shape[1])))

        wq_ov = jnp.concatenate([wq['ope'], wq['veh']], axis=1)            # [E, 2C]
        wc_ov = jnp.zeros((2 * C, 2 * E), jnp.float32)
        wc_ov = wc_ov.at[:C, :E].set(wc['ope']).at[C:, E:].set(wc['veh'])  # block-diag combine
        self.w_slab = jnp.concatenate(
            [padc(w_proj), padc(wq['nodes']), padc(wc['nodes']),
             padc(wq_ov), padc(wc_ov), padc(wq['ma']), padc(wc['ma'])],
            axis=0).astype(jnp.bfloat16)
        self.bias_slab = jnp.concatenate(
            [b_proj, bc['nodes'], bc['ope'], bc['veh'], bc['ma']], axis=1)  # [1, 5E] f32

        self.W_proj_ope = _init_linear(keys[18], E, E, bias=False)          # unused in forward
        self._parts = {}
        self._n = {}
        self.kv_slab = None
        self.Np = _LANE

    # ---- K/V caches ----------------------------------------------------------
    def _store_stage(self, name, k, v, enc=None):
        """k, v: [B, n, C] bf16 -> stored transposed [B, C, n]; enc stored bf16 [B, E, n]."""
        st = dict(n=k.shape[1],
                  kt=jnp.transpose(k, (0, 2, 1)),
                  vt=jnp.transpose(v, (0, 2, 1)))
        if enc is not None:
            st['enc'] = jnp.transpose(enc, (0, 2, 1)).astype(jnp.bfloat16)
        self._parts[name] = st
        self._maybe_build_slab()

    def _maybe_build_slab(self):
        p = self._parts
        if not all(s in p for s in ('nodes', 'ope', 'ma', 'veh')):
            return
        self._n = {s: p[s]['n'] for s in ('nodes', 'ope', 'ma', 'veh')}
        Np = _round_up(max(self._n.values()), _LANE)
        self.Np = Np

        def pad(x):
            return _pad_last(x, Np)

        # layout consumed by the kernel:
        # [kt_nodes | vt_nodes | kt_ope | kt_veh | vt_ope | vt_veh | kt_ma | vt_ma |
        #  enc_ope | enc_veh | enc_ma]
        self.kv_slab = jnp.concatenate(
            [pad(p['nodes']['kt']), pad(p['nodes']['vt']),
             pad(p['ope']['kt']), pad(p['veh']['kt']),
             pad(p['ope']['vt']), pad(p['veh']['vt']),
             pad(p['ma']['kt']), pad(p['ma']['vt']),
             pad(p['ope']['enc']), pad(p['veh']['enc']), pad(p['ma']['enc'])],
            axis=1)

    def set_all_kv(self, encoded_opes, encoded_mas, encoded_vehs):
        """All eight K/V projections in one [E, 8*H*D] matmul, then build the slab."""
        C = self.C
        enc_nodes = jnp.concatenate([encoded_opes, encoded_mas, encoded_vehs], axis=1)
        n_o, n_m = encoded_opes.shape[1], encoded_mas.shape[1]
        kv = project_kv(enc_nodes, self.w_kv_all)                # [B, Ntot, 8C] bf16
        self._store_stage('nodes', kv[:, :, 0:C], kv[:, :, C:2 * C])
        self._store_stage('ope', kv[:, :n_o, 2 * C:3 * C], kv[:, :n_o, 3 * C:4 * C],
                          enc=encoded_opes)
        self._store_stage('ma', kv[:, n_o:n_o + n_m, 4 * C:5 * C],
                          kv[:, n_o:n_o + n_m, 5 * C:6 * C], enc=encoded_mas)
        self._store_stage('veh', kv[:, n_o + n_m:, 6 * C:7 * C],
                          kv[:, n_o + n_m:, 7 * C:8 * C], enc=encoded_vehs)

    def set_nodes_kv(self, encoded_nodes):
        kv = project_kv(encoded_nodes, self.w_kv_pair['nodes'])
        self._store_stage('nodes', kv[..., :self.C], kv[..., self.C:])

    def set_ope_kv(self, encoded_opes):
        kv = project_kv(encoded_opes, self.w_kv_pair['ope'])
        self._store_stage('ope', kv[..., :self.C], kv[..., self.C:], enc=encoded_opes)

    def set_ma_kv(self, encoded_mas):
        kv = project_kv(encoded_mas, self.w_kv_pair['ma'])
        self._store_stage('ma', kv[..., :self.C], kv[..., self.C:], enc=encoded_mas)

    def set_veh_kv(self, encoded_vehs):
        kv = project_kv(encoded_vehs, self.w_kv_pair['veh'])
        self._store_stage('veh', kv[..., :self.C], kv[..., self.C:], enc=encoded_vehs)

    # ---- forward --------------------------------------------------------------
    def forward(self, embed_nodes, embed_context, prev_emb, state, mask, mask_ope_ma,
                mask_veh, rng_key, training=False, eval_type='softmax', baseline=False,
                job_embedding=False):
        assert self.kv_slab is not None, "call set_all_kv / set_*_kv first"
        E, H, D = self.E, self.H, self.D
        B, num_opes, num_mas = state['ope_ma_adj_batch'].shape
        num_jobs = state['mask_job_procing_batch'].shape[1]
        batch_idxes = state['batch_idxes']
        Np = self.Np
        softmax = bool((training or eval_type == 'softmax') and (not baseline))

        ope_step = jnp.where(state['ope_step_batch'] > state['end_ope_biases_batch'],
                             state['end_ope_biases_batch'],
                             state['ope_step_batch']).astype(jnp.int32)
        non_finish = jnp.zeros((B, 1), jnp.bool_).at[batch_idxes].set(True)
        finish_i = jnp.logical_not(non_finish).astype(jnp.int32)

        num_opes_jobs = num_jobs if job_embedding else num_opes
        mask_om_i = (mask if job_embedding else mask_ope_ma).astype(jnp.int32)
        mask_jm_i = mask.astype(jnp.int32)
        mask_veh_i = mask_veh.astype(jnp.int32)

        prev2 = prev_emb.reshape(B, 3 * E).astype(jnp.float32)

        if softmax:
            gumbel = jax.random.gumbel(rng_key, (B, 3, Np), jnp.float32)
        else:
            gumbel = jnp.zeros((B, 3, Np), jnp.float32)

        out_w = _round_up(3 * E + 1, _LANE)
        kern = functools.partial(
            _decode_step_kernel,
            head_num=H, qkv_dim=D, emb=E,
            n_ope=self._n['ope'], n_ma=self._n['ma'], n_veh=self._n['veh'],
            emb_ma_off=num_opes_jobs, emb_veh_off=num_opes_jobs + num_mas,
            inv_sqrt_qkv=1.0 / self.sqrt_qkv_dim,
            inv_sqrt_emb=1.0 / self.sqrt_embedding_dim,
            logit_clipping=self.logit_clipping,
            softmax=softmax, job_embedding=job_embedding)

        operands = (embed_nodes.astype(jnp.float32), prev2, ope_step, finish_i,
                    mask_jm_i, mask_om_i, mask_veh_i, gumbel,
                    self.kv_slab, self.w_slab, self.bias_slab)
        f32_out, idx_out = pl.pallas_call(
            kern,
            out_shape=(jax.ShapeDtypeStruct((B, out_w), jnp.float32),
                       jax.ShapeDtypeStruct((B, 4), jnp.int32)),
            in_specs=_vmem_specs(len(operands)),
            out_specs=(pl.BlockSpec(memory_space=pltpu.MemorySpace.VMEM),
                       pl.BlockSpec(memory_space=pltpu.MemorySpace.VMEM)),
        )(*operands)

        select_embed = f32_out[:, :3 * E].reshape(B, 1, 3 * E)
        log_prob = f32_out[:, 3 * E:3 * E + 1]
        action = idx_out.T                    # rows: [select_ope, select_ma, select_job, select_veh]
        return action, log_prob, select_embed


# ----------------------------------------------------------------------------
# Demo
# ----------------------------------------------------------------------------
if __name__ == "__main__":
    E, H, D = 32, 4, 8
    B, n_jobs, n_opes, n_mas, n_vehs = 2, 3, 6, 4, 3
    model_params = dict(embedding_dim=E, head_num=H, qkv_dim=D,
                        sqrt_embedding_dim=math.sqrt(E), sqrt_qkv_dim=math.sqrt(D),
                        logit_clipping=10.0)

    root = jax.random.PRNGKey(0)
    k_param, k_data, k_sample = jax.random.split(root, 3)
    dec = TFJSPDecoderDHJSBasePallas(k_param, **model_params)

    kd = jax.random.split(k_data, 2)
    n_nodes = n_opes + n_mas + n_vehs
    embed_nodes = jax.random.normal(kd[0], (B, n_nodes, E), jnp.float32)
    prev_emb = jax.random.normal(kd[1], (B, 1, 3 * E), jnp.float32)

    # schedulable state: job j owns opes {2j, 2j+1}; current steps below
    ope_step_batch = jnp.array([[0, 2, 4], [1, 3, 5]], jnp.int32)
    end_ope_biases = jnp.array([[1, 3, 5], [1, 3, 5]], jnp.int32)
    mask = jnp.ones((B, n_jobs, n_mas), jnp.bool_)
    mask_veh = jnp.ones((B, n_vehs), jnp.bool_)
    mask_ope_ma = jnp.zeros((B, n_opes, n_mas), jnp.bool_)
    mask_ope_ma = mask_ope_ma.at[jnp.arange(B)[:, None], ope_step_batch, :].set(True)

    state = dict(
        ope_ma_adj_batch=jnp.ones((B, n_opes, n_mas), jnp.int32),
        mask_job_procing_batch=jnp.zeros((B, n_jobs), jnp.bool_),
        batch_idxes=jnp.arange(B, dtype=jnp.int32),
        ope_step_batch=ope_step_batch,
        end_ope_biases_batch=end_ope_biases,
    )

    # fused K/V + single-head-key projections / slab build (setup, off the hot loop)
    encoded_opes = embed_nodes[:, :n_opes]
    encoded_mas = embed_nodes[:, n_opes:n_opes + n_mas]
    encoded_vehs = embed_nodes[:, n_opes + n_mas:]
    dec.set_all_kv(encoded_opes, encoded_mas, encoded_vehs)

    action, log_prob, select_embed = dec.forward(
        embed_nodes, None, prev_emb, state, mask, mask_ope_ma, mask_veh,
        rng_key=k_sample, training=False, eval_type='softmax', baseline=False,
        job_embedding=False)

    jax.block_until_ready((action, log_prob, select_embed))
    assert action.shape == (4, B)
    assert log_prob.shape == (B, 1)
    assert select_embed.shape == (B, 1, 3 * E)
    assert not bool(jnp.isnan(log_prob).any())
    assert bool((action[0] < n_opes).all() and (action[1] < n_mas).all()
                and (action[2] < n_jobs).all() and (action[3] < n_vehs).all())
    print("KERNEL_OK")
</pallas_src>

<mosaic_0001>
module attributes {stable_mosaic.version = 11 : i64} {
  func.func @_proj_kv_kernel(%arg0: memref<26x32xbf16, #tpu.memory_space<vmem>>, %arg1: memref<32x256xbf16, #tpu.memory_space<vmem>>, %arg2: memref<26x256xbf16, #tpu.memory_space<vmem>>) attributes {dimension_semantics = [], scalar_prefetch = 0 : i64, scratch_operands = 0 : i64, tpu.core_type = #tpu.core_type<tc>} {
    %c0 = arith.constant 0 : index
    %c0_0 = arith.constant 0 : index
    %0 = vector.load %arg0[%c0, %c0_0] : memref<26x32xbf16, #tpu.memory_space<vmem>>, vector<26x32xbf16>
    %c0_1 = arith.constant 0 : index
    %c0_2 = arith.constant 0 : index
    %1 = vector.load %arg1[%c0_1, %c0_2] : memref<32x256xbf16, #tpu.memory_space<vmem>>, vector<32x256xbf16>
    %cst = arith.constant dense<0.000000e+00> : vector<26x256xf32>
    %2 = tpu.matmul %0, %1, %cst {dimension_numbers = #tpu.dot_dimension_numbers<[1], [0], [0], [1], [0, 0, 1, 1], [], []>} : vector<26x32xbf16>, vector<32x256xbf16>, vector<26x256xf32> -> vector<26x256xf32>
    %3 = arith.truncf %2 : vector<26x256xf32> to vector<26x256xbf16>
    %c0_3 = arith.constant 0 : index
    %c0_4 = arith.constant 0 : index
    %4 = vector.load %arg2[%c0_3, %c0_4] : memref<26x256xbf16, #tpu.memory_space<vmem>>, vector<26x256xbf16>
    tpu.vector_store %arg2[%c0_3, %c0_4], %3 {strides = array<i32>} : memref<26x256xbf16, #tpu.memory_space<vmem>>, vector<26x256xbf16>,
    return
  }
}

</mosaic_0001>

<bundles_post_ra>
// kernel: tpu_custom_call.1
= control target key start
LH: loop header
LB: loop body
LE: loop exit
PB: predicated region body
PF: predicated region fallthrough
CT: control target
= control target key end

     0   :  { %7 = vsyncpa [#allocation3], 0  ;;  %s325_s0 = inlined_call_operand.hbm [shape: bf16[26,32], index: 0, kind: input, shape index: {}]   ;;  %s326_s1 = inlined_call_operand.hbm [shape: bf16[32,256], index: 1, kind: input, shape index: {}]   ;;  %s327_s2 = inlined_call_operand.hbm [shape: bf16[26,256], index: 2, kind: output, shape index: {}]  }
   0x1   :  { %8 = vsyncpa [#allocation6], 0 }
   0x2   :  { %9 = vsyncpa [#allocation4], 0  ;;  %s287_s9 = smov [#allocation2]  }
   0x3   :  { %s15_s10 = sshll.u32 %s287_s9, 4  ;;  %s16_s10 = int_to_ptr.vmem [resolvable:$true] %s15_s10 }
   0x4   :  { %s229_s11 = scalar_lea.vmem %s16_s10, 256  ;;  %p234_p1 = scmp.lt.s32.totalorder %s16_s10, %s16_s10 }
   0x5   :  { %p230_p0 = scmp.ne.s32.totalorder %s16_s10, %s229_s11  ;;  %p235_p2 = scmp.lt.s32.totalorder %s229_s11, %s229_s11 }
   0x7   :  { %p236_p3 = por %p235_p2, %p234_p1 }
   0x9   :  { %p237_p4 = pnand %p236_p3, %p230_p0 }
   0xb   :  { %240 = shalt.err (!%p237_p4)
}
   0xc   :  { %s288_s12 = smov 64   ;;  %s289_s13 = smov 4  }
   0xd   :  { %21 = dma.hbm_to_vmem [thread:$0]  %s325_s0, 256, %s16_s10, [#allocation3], %s288_s12, %s288_s12, %s289_s13  }
   0xe   :  { %s290_s16 = smov [#allocation5]  }
   0xf   :  { %s27_s17 = sshll.u32 %s290_s16, 4  ;;  %s28_s17 = int_to_ptr.vmem [resolvable:$true] %s27_s17 }
  0x10   :  { %s249_s18 = scalar_lea.vmem %s28_s17, 512  ;;  %p254_p6 = scmp.lt.s32.totalorder %s28_s17, %s28_s17 }
  0x11   :  { %p250_p5 = scmp.ne.s32.totalorder %s28_s17, %s249_s18  ;;  %p255_p7 = scmp.lt.s32.totalorder %s249_s18, %s249_s18 }
  0x13   :  { %p256_p8 = por %p255_p7, %p254_p6 }
  0x15   :  { %p257_p9 = pnand %p256_p8, %p250_p5 }
  0x17   :  { %260 = shalt.err (!%p257_p9)
}
  0x18   :  { %s291_s19 = smov 128   ;;  %s292_s20 = smov 8  }
  0x19   :  { %33 = dma.hbm_to_vmem [thread:$0]  %s326_s1, 512, %s28_s17, [#allocation6], %s291_s19, %s291_s19, %s292_s20  }
  0x1a   :  { %281 = dma.done.wait [#allocation3], 256  }
  0x1b   :  { %282 = vsyncadd [#allocation3], 4294967040 }
  0x1c   :  { %283 = dma.done.wait [#allocation6], 512  }
  0x1d   :  { %284 = vsyncadd [#allocation6], 4294966784  ;;  %v293_v0 = vmov 0   ;;  %v213_v1 = vld [vmem:[#allocation5 + $0x14] ss:$8 sps:$4 sm:$0xff]   ;;  %vm79_vm0 = vcmask 261120  }
  0x1e   :  { %118 = vmatprep.mubr.bf16.mxu0 %v293_v0  ;;  %128 = vmatprep.mubr.bf16.mxu1 %v293_v0  ;;  %v215_v2 = vld [vmem:[#allocation5 + $0x10] ss:$8 sps:$4 sm:$0xff]   ;;  %v216_v3 = vld [vmem:[#allocation5 + $0x4] ss:$8 sps:$4 sm:$0xff]   ;;  %v218_v4 = vld [vmem:[#allocation5] ss:$8 sps:$4 sm:$0xff]  }
  0x1f   :  { %98 = vmatprep.subr.bf16.mxu0 %v213_v1  ;;  %201 = vmatprep.subr.bf16.mxu1 %v213_v1  ;;  %v219_v5 = vld [vmem:[#allocation2] sm:$0xff]   ;;  %v220_v6 = vld [vmem:[#allocation2 + $0x8] sm:$0x1f]   ;;  %s294_s0 = smov [#allocation7]  }
  0x20   :  { %99 = vmatpush1.bf16.msra.mxu0 %v215_v2  ;;  %203 = vmatpush1.bf16.msra.mxu1 %v215_v2  ;;  %s172_s1 = sshll.u32 %s294_s0, 4  ;;  %s173_s1 = int_to_ptr.vmem [resolvable:$true] %s172_s1 }
  0x21   :  { %100 = vmatprep.subr.bf16.mxu0 %v216_v3  ;;  %202 = vmatprep.subr.bf16.mxu1 %v216_v3  ;;  %s261_s23 = scalar_lea.vmem %s173_s1, 512  ;;  %p266_p11 = scmp.lt.s32.totalorder %s173_s1, %s173_s1 }
  0x22   :  { %p262_p10 = scmp.ne.s32.totalorder %s173_s1, %s261_s23  ;;  %p267_p12 = scmp.lt.s32.totalorder %s261_s23, %s261_s23 }
  0x24   :  { %101 = vmatpush1.bf16.msra.mxu0 %v218_v4  ;;  %204 = vmatpush1.bf16.msra.mxu1 %v218_v4  ;;  %p268_p13 = por %p267_p12, %p266_p11 }
  0x26   :  { %p269_p0 = pnand %p268_p13, %p262_p10 }
  0x27   :  { %191 = vmatmul.mubr.msk.bf16.vlgmr.msra.gmra.mxu0 %vm79_vm0, %v219_v5  ;;  %192 = vmatmul.mubr.msk.bf16.vlgmr.msra.gmra.mxu1 %vm79_vm0, %v220_v6 }
  0xe7   :  { %v120_v7 = vpop.f32.mrf.mxu0  ;;  %v130_v8 = vpop.f32.mrf.mxu1 }
  0xe9   :  { %v122_v9 = vpop.f32.mrf.mxu0  ;;  %v132_v10 = vpop.f32.mrf.mxu1 }
  0xea   :  { %v197_v11 = vpack.c.bf16 %v122_v9, %v120_v7  ;;  %v199_v12 = vpack.c.bf16 %v132_v10, %v130_v8 }
  0xeb   :  { %v124_v13 = vpop.f32.mrf.mxu0  ;;  %v134_v14 = vpop.f32.mrf.mxu1 }
  0xec   :  { %163 = vst [vmem:[#allocation7] sm:$0xff] %v197_v11  ;;  %165 = vst [vmem:[#allocation7 + $0x10] sm:$0xff] %v199_v12 }
  0xed   :  { %v126_v15 = vpop.f32.mrf.mxu0  ;;  %v136_v16 = vpop.f32.mrf.mxu1 }
  0xee   :  { %v198_v17 = vpack.c.bf16 %v126_v15, %v124_v13  ;;  %v200_v18 = vpack.c.bf16 %v136_v16, %v134_v14 }
  0xf0   :  { %164 = vst [vmem:[#allocation7 + $0x8] sm:$0xff] %v198_v17  ;;  %166 = vst [vmem:[#allocation7 + $0x18] sm:$0x11] %v200_v18 }
  0xf1   :  { %272 = shalt.err (!%p269_p0)
}
  0xf2   :  { %178 = dma.vmem_to_hbm [thread:$0]  %s173_s1, 512, %s327_s2, [#allocation4], %s291_s19, %s291_s19, %s292_s20  }
  0xf3   :  { %285 = dma.done.wait [#allocation4], 512  }
  0xf4   :  { %286 = vsyncadd [#allocation4], 4294966784 }
  0xf5   :  { %182 = vsyncpa [#allocation3], 1 }
  0xf6   :  { %183 = vsyncpa [#allocation6], 1 }
  0xf7   :  { %184 = vsyncpa [#allocation4], 1 }

</bundles_post_ra>
